<compile_context>
chip_gen: v7x
topology: tpu7x:2x2x1
jax: 0.10.0
libtpu: 0.0.40
codegen_flags: <defaults>
</compile_context>

<pallas_src>
import functools
import re

import jax
import jax.numpy as jnp
from jax import lax
from jax.experimental import pallas as pl
from jax.experimental.pallas import tpu as pltpu

LN_EPS = 1e-12

# ----------------------------------------------------------------------------
# Chip-dependent tuning knobs.
# ----------------------------------------------------------------------------
try:
    _DEVICE_KIND = jax.devices()[0].device_kind.lower()
except Exception:  # pragma: no cover
    _DEVICE_KIND = ""
_m = re.search(r"v(\d+)", _DEVICE_KIND)
_TPU_GEN = int(_m.group(1)) if _m else 6

# v6e/v7x MXU is 2x256x256: one K=(H+A) pass fills the systolic depth.
# v5e (and older) MXU is 128-deep: keep the native-depth split-K dots.
_MERGE_K = _TPU_GEN >= 6
# Batch-tile cap: fill the 256-row M dimension on v6e/v7x, 128 on v5e.
_MAX_TB = 256 if _TPU_GEN >= 6 else 128


def _round_up(x, m):
    return (x + m - 1) // m * m


def _pad_rows(x, rows):
    pad = rows - x.shape[0]
    if pad == 0:
        return x
    return jnp.pad(x, ((0, pad),) + ((0, 0),) * (x.ndim - 1))


def _choose_tb(B, max_tb=None):
    """Largest multiple-of-8 batch tile up to the per-chip cap, but keep the
    grid length >= 2 whenever B allows so v7x's two TensorCores both get a
    'parallel' step."""
    max_tb = _MAX_TB if max_tb is None else max_tb
    if B <= 8:
        return 8
    half = _round_up((B + 1) // 2, 8)
    return max(8, min(max_tb, half))


def _vmem_limit_bytes(est_bytes):
    # Explicit VMEM budget (review item): 2x headroom over the static
    # estimate, floor at 32 MiB, capped below v7x's 64 MiB physical VMEM.
    return int(min(48 << 20, max(32 << 20, 2 * est_bytes + (4 << 20))))


# ----------------------------------------------------------------------------
# pipeline_mode=pl.Buffered(1) support probe (single-buffer resident params).
# ----------------------------------------------------------------------------
_SINGLE_BUF_OK = None


def _single_buffer_supported():
    """Probe whether pipeline_mode=pl.Buffered(1) is accepted AND numerically
    correct for a constant-index parameter block on this JAX/Mosaic build."""
    global _SINGLE_BUF_OK
    if _SINGLE_BUF_OK is not None:
        return _SINGLE_BUF_OK
    try:
        def k(p_ref, x_ref, o_ref):
            o_ref[...] = x_ref[...] + p_ref[...]

        f = pl.pallas_call(
            k,
            out_shape=jax.ShapeDtypeStruct((16, 128), jnp.float32),
            grid=(2,),
            in_specs=[
                pl.BlockSpec((1, 128), lambda i: (0, 0),
                             pipeline_mode=pl.Buffered(1)),
                pl.BlockSpec((8, 128), lambda i: (i, 0)),
            ],
            out_specs=pl.BlockSpec((8, 128), lambda i: (i, 0)),
        )
        r = f(jnp.ones((1, 128), jnp.float32),
              jnp.zeros((16, 128), jnp.float32))
        _SINGLE_BUF_OK = bool(jnp.all(r == 1.0))
    except Exception:
        _SINGLE_BUF_OK = False
    return _SINGLE_BUF_OK


def _param_spec(shape, single_buffer):
    """BlockSpec for a grid-resident parameter block (constant index_map)."""
    zero = (0,) * len(shape)
    if single_buffer:
        return pl.BlockSpec(shape, lambda *_: zero,
                            pipeline_mode=pl.Buffered(1))
    return pl.BlockSpec(shape, lambda *_: zero)


# ----------------------------------------------------------------------------
# Kernel 1:  y = LayerNorm(tanh(concat(h, a) @ W + b))
# ----------------------------------------------------------------------------
def _action_state_kernel(h_ref, a_ref, w_ref, b_ref, g_ref, bt_ref, o_ref,
                         *, eps, merge_k):
    H = h_ref.shape[1]
    A = a_ref.shape[1]
    h = h_ref[...].astype(w_ref.dtype)
    a = a_ref[...].astype(w_ref.dtype)
    if merge_k:
        # v6e/v7x: single full-depth K=(H+A) MXU pass on the lane-concat.
        y = jnp.dot(jnp.concatenate([h, a], axis=-1), w_ref[...],
                    preferred_element_type=jnp.float32)
    else:
        # v5e: two native-depth passes against static sublane slices of W.
        y = (jnp.dot(h, w_ref[pl.ds(0, H), :],
                     preferred_element_type=jnp.float32)
             + jnp.dot(a, w_ref[pl.ds(H, A), :],
                       preferred_element_type=jnp.float32))
    y = jnp.tanh(y + b_ref[...])                        # f32, EUP
    # LN reduces over the FULL (unpadded) hidden width H -- H is never padded
    # inside these kernels, so mean/var denominators are exact.
    u = jnp.mean(y, axis=-1, keepdims=True)
    s = jnp.mean((y - u) * (y - u), axis=-1, keepdims=True)
    y = (y - u) * lax.rsqrt(s + eps)                    # exact rsqrt (EUP slot)
    o_ref[...] = (g_ref[...] * y + bt_ref[...]).astype(o_ref.dtype)


def action_state_project_ln(h, a, w, b, gamma, beta, eps=LN_EPS):
    """BertLayerNorm(tanh(cat(h, a) @ W + b)); W is the unsplit (H+A, H) slab.

    b / gamma / beta must already be (1, H) float32 (done once in params)."""
    B, H = h.shape
    A = a.shape[1]
    assert w.shape == (H + A, H)
    assert b.shape == (1, H) and gamma.shape == (1, H) and beta.shape == (1, H)

    tb = _choose_tb(B)
    Bp = _round_up(B, tb)
    h_p = _pad_rows(h, Bp)
    a_p = _pad_rows(a, Bp)
    single_buf = _single_buffer_supported()

    wbytes = (H + A) * H * jnp.dtype(w.dtype).itemsize
    pbuf = 1 if single_buf else 2
    vmem_est = 2 * tb * (2 * H + A) * 4 + wbytes * pbuf + 3 * H * 4 * pbuf

    cost = pl.CostEstimate(
        flops=2 * Bp * (H + A) * H + 10 * Bp * H,
        transcendentals=Bp * H + Bp,
        bytes_accessed=Bp * (2 * H + A) * 4 + wbytes + 3 * H * 4)

    out = pl.pallas_call(
        functools.partial(_action_state_kernel, eps=eps, merge_k=_MERGE_K),
        out_shape=jax.ShapeDtypeStruct((Bp, H), jnp.float32),
        grid=(Bp // tb,),
        in_specs=[
            pl.BlockSpec((tb, H), lambda i: (i, 0)),     # h tile (streamed)
            pl.BlockSpec((tb, A), lambda i: (i, 0)),     # action tile
            _param_spec((H + A, H), single_buf),         # W       (resident)
            _param_spec((1, H), single_buf),             # bias    (resident)
            _param_spec((1, H), single_buf),             # LN gamma
            _param_spec((1, H), single_buf),             # LN beta
        ],
        out_specs=pl.BlockSpec((tb, H), lambda i: (i, 0)),
        compiler_params=pltpu.CompilerParams(
            dimension_semantics=("parallel",),
            vmem_limit_bytes=_vmem_limit_bytes(vmem_est)),
        cost_estimate=cost,
    )(h_p, a_p, w, b, gamma, beta)
    return out[:B]


# ----------------------------------------------------------------------------
# Kernel 2:  vl = LN1(al * av);  y = LN2(concat(h, vl) @ W + b)
# ----------------------------------------------------------------------------
def _state_fuse_kernel(h_ref, al_ref, av_ref, g1_ref, b1_ref, w_ref, b_ref,
                       g2_ref, b2_ref, o_ref, *, eps, merge_k):
    H = h_ref.shape[1]
    # vis_lang_LayerNorm(attended_language * attended_visual), all f32.
    vl = al_ref[...].astype(jnp.float32) * av_ref[...].astype(jnp.float32)
    u = jnp.mean(vl, axis=-1, keepdims=True)
    s = jnp.mean((vl - u) * (vl - u), axis=-1, keepdims=True)
    vl = g1_ref[...] * ((vl - u) * lax.rsqrt(s + eps)) + b1_ref[...]

    # state_proj on concat(h_t, vl).
    h = h_ref[...].astype(w_ref.dtype)
    v = vl.astype(w_ref.dtype)
    if merge_k:
        y = jnp.dot(jnp.concatenate([h, v], axis=-1), w_ref[...],
                    preferred_element_type=jnp.float32)
    else:
        y = (jnp.dot(h, w_ref[pl.ds(0, H), :],
                     preferred_element_type=jnp.float32)
             + jnp.dot(v, w_ref[pl.ds(H, H), :],
                       preferred_element_type=jnp.float32))
    y = y + b_ref[...]

    # state_LayerNorm.
    u = jnp.mean(y, axis=-1, keepdims=True)
    s = jnp.mean((y - u) * (y - u), axis=-1, keepdims=True)
    o_ref[...] = (g2_ref[...] * ((y - u) * lax.rsqrt(s + eps))
                  + b2_ref[...]).astype(o_ref.dtype)


def state_fuse(h_t, att_lang, att_vis, g1, b1, w, b, g2, b2, eps=LN_EPS):
    """state_LN(state_proj(cat(h_t, vis_lang_LN(att_lang*att_vis)))).
    W is the unsplit (2H, H) slab; LN/bias params are (1, H) float32."""
    B, H = h_t.shape
    assert w.shape == (2 * H, H)

    tb = _choose_tb(B)
    Bp = _round_up(B, tb)
    h_p = _pad_rows(h_t, Bp)
    al_p = _pad_rows(att_lang, Bp)
    av_p = _pad_rows(att_vis, Bp)
    single_buf = _single_buffer_supported()

    wbytes = 2 * H * H * jnp.dtype(w.dtype).itemsize
    pbuf = 1 if single_buf else 2
    vmem_est = 2 * tb * (4 * H) * 4 + wbytes * pbuf + 5 * H * 4 * pbuf

    cost = pl.CostEstimate(
        flops=4 * Bp * H * H + 24 * Bp * H,
        transcendentals=2 * Bp,
        bytes_accessed=4 * Bp * H * 4 + wbytes + 5 * H * 4)

    out = pl.pallas_call(
        functools.partial(_state_fuse_kernel, eps=eps, merge_k=_MERGE_K),
        out_shape=jax.ShapeDtypeStruct((Bp, H), jnp.float32),
        grid=(Bp // tb,),
        in_specs=[
            pl.BlockSpec((tb, H), lambda i: (i, 0)),     # h_t tile
            pl.BlockSpec((tb, H), lambda i: (i, 0)),     # attended_lang tile
            pl.BlockSpec((tb, H), lambda i: (i, 0)),     # attended_vis tile
            _param_spec((1, H), single_buf),             # vl LN gamma
            _param_spec((1, H), single_buf),             # vl LN beta
            _param_spec((2 * H, H), single_buf),         # W (resident)
            _param_spec((1, H), single_buf),             # bias
            _param_spec((1, H), single_buf),             # state LN gamma
            _param_spec((1, H), single_buf),             # state LN beta
        ],
        out_specs=pl.BlockSpec((tb, H), lambda i: (i, 0)),
        compiler_params=pltpu.CompilerParams(
            dimension_semantics=("parallel",),
            vmem_limit_bytes=_vmem_limit_bytes(vmem_est)),
        cost_estimate=cost,
    )(h_p, al_p, av_p, g1, b1, w, b, g2, b2)
    return out[:B]


# ----------------------------------------------------------------------------
# Pure-JAX references for the two Pallas kernels (bf16-quantized weights,
# bf16-quantized activations into the matmul, f32 everywhere else).
# ----------------------------------------------------------------------------
def _ln_ref(x, g, b, eps=LN_EPS):
    u = jnp.mean(x, -1, keepdims=True)
    s = jnp.mean((x - u) ** 2, -1, keepdims=True)
    return g * ((x - u) / jnp.sqrt(s + eps)) + b


def _bf16(x):
    return x.astype(jnp.bfloat16).astype(jnp.float32)


def _action_state_ref(h, a, w, b, g, bt):
    x = jnp.concatenate([_bf16(h), _bf16(a)], axis=-1)
    y = jnp.tanh(x @ w.astype(jnp.float32) + b)
    return _ln_ref(y, g, bt)


def _state_fuse_ref(h, al, av, g1, b1, w, b, g2, b2):
    vl = _ln_ref(al * av, g1, b1)
    x = jnp.concatenate([_bf16(h), _bf16(vl)], axis=-1)
    y = x @ w.astype(jnp.float32) + b
    return _ln_ref(y, g2, b2)


# ----------------------------------------------------------------------------
# Surrogate for the external self.vln_bert(...) visual-mode call (plain JAX).
# TODO(synk): real VLN-BERT (LXMERT cross-modal transformer) not reproducible
# here; this deterministic surrogate only supplies shape-correct outputs.
# ----------------------------------------------------------------------------
def vln_bert_visual_surrogate(state_feats, lang_mask, vis_mask, cand_feats,
                              w_img):
    B, S, H = state_feats.shape
    h_t = state_feats[:, 0, :]                                   # (B, H)
    cand_proj = jnp.einsum('bcf,fh->bch', cand_feats, w_img)     # (B, C, H)

    vis_scores = jnp.einsum('bh,bch->bc', h_t, cand_proj) / jnp.sqrt(float(H))
    vis_scores = jnp.where(vis_mask > 0, vis_scores, -1e9)
    logit = vis_scores
    vis_probs = jax.nn.softmax(vis_scores, axis=-1)
    attended_visual = jnp.einsum('bc,bch->bh', vis_probs, cand_proj)

    lang_tokens = state_feats[:, 1:, :]                          # (B, S-1, H)
    lm = lang_mask[:, 1:]
    lang_scores = jnp.einsum('bh,bsh->bs', h_t, lang_tokens) / jnp.sqrt(float(H))
    lang_scores = jnp.where(lm > 0, lang_scores, -1e9)
    lang_probs = jax.nn.softmax(lang_scores, axis=-1)            # (B, S-1)
    attended_language = jnp.einsum('bs,bsh->bh', lang_probs, lang_tokens)

    return h_t, logit, attended_language, attended_visual, lang_probs


# ----------------------------------------------------------------------------
# Parameter preparation (biases / LN params stored as (1, H) f32 once;
# matmul weights stored as unsplit bf16 slabs).
# ----------------------------------------------------------------------------
def make_params(key, H, A, F):
    ks = jax.random.split(key, 5)
    w_act = 0.05 * jax.random.normal(ks[0], (H + A, H), jnp.float32)
    w_state = 0.05 * jax.random.normal(ks[1], (2 * H, H), jnp.float32)
    return {
        'w_act': w_act.astype(jnp.bfloat16),                  # (H+A, H)
        'b_act': 0.01 * jax.random.normal(ks[2], (1, H), jnp.float32),
        'g_act_ln': jnp.ones((1, H), jnp.float32),
        'b_act_ln': jnp.zeros((1, H), jnp.float32),
        'w_img': 0.05 * jax.random.normal(ks[3], (F, H), jnp.float32),
        'g_vl_ln': jnp.ones((1, H), jnp.float32),
        'b_vl_ln': jnp.zeros((1, H), jnp.float32),
        'w_state': w_state.astype(jnp.bfloat16),               # (2H, H)
        'b_state': 0.01 * jax.random.normal(ks[4], (1, H), jnp.float32),
        'g_state_ln': jnp.ones((1, H), jnp.float32),
        'b_state_ln': jnp.zeros((1, H), jnp.float32),
    }


# ----------------------------------------------------------------------------
# VLNBERT forward, 'visual' mode
# ----------------------------------------------------------------------------
def vlnbert_visual_forward(params, sentence, action_feats, cand_feats,
                           lang_mask, vis_mask, angle_feat_size):
    # action_state_project (Linear+Tanh) + action_LayerNorm -- Pallas kernel 1.
    state_with_action = action_state_project_ln(
        sentence[:, 0, :], action_feats,
        params['w_act'], params['b_act'],
        params['g_act_ln'], params['b_act_ln'])

    # state_feats = cat(state_with_action.unsqueeze(1), sentence[:,1:,:])
    state_feats = jnp.concatenate(
        [state_with_action[:, None, :], sentence[:, 1:, :]], axis=1)

    # drop_env on cand_feats[..., :-angle_feat_size]: eval mode -> identity.
    # TODO(synk): training-mode feature dropout not implemented.
    del angle_feat_size

    # external cross-modal transformer (surrogate)
    h_t, logit, att_lang, att_vis, lang_attn_probs = vln_bert_visual_surrogate(
        state_feats, lang_mask, vis_mask, cand_feats, params['w_img'])

    # vis_lang_LayerNorm + state_proj + state_LayerNorm -- Pallas kernel 2
    state_proj = state_fuse(
        h_t, att_lang, att_vis,
        params['g_vl_ln'], params['b_vl_ln'],
        params['w_state'], params['b_state'],
        params['g_state_ln'], params['b_state_ln'])

    return state_proj, logit, lang_attn_probs


if __name__ == "__main__":
    # Small lane/sublane-dense demo shapes (B=16 -> a 2-step parallel grid so
    # v7x's second TensorCore is exercised; angle_feat_size=128 matches R2R).
    # NOTE: at these shapes both kernels are launch/DMA-latency bound; the
    # tiling/MXU-depth choices above are aimed at B>=64, H=768 production use.
    B, S, H = 16, 8, 128        # batch, seq, hidden
    A = 128                     # angle_feat_size
    C = 8                       # num candidate directions
    IMG = 128
    F = IMG + A                 # feature_size (img + angle)

    key = jax.random.PRNGKey(0)
    kp, kd = jax.random.split(key)
    params = make_params(kp, H, A, F)

    ks = jax.random.split(kd, 6)
    sentence = jax.random.normal(ks[0], (B, S, H), jnp.float32)
    action_feats = jax.random.normal(ks[1], (B, A), jnp.float32)
    cand_feats = jax.random.normal(ks[2], (B, C, F), jnp.float32)
    lang_mask = jnp.ones((B, S), jnp.float32)
    vis_mask = jnp.ones((B, C), jnp.float32)

    state_proj, logit, lang_attn_probs = vlnbert_visual_forward(
        params, sentence, action_feats, cand_feats, lang_mask, vis_mask, A)
    jax.block_until_ready((state_proj, logit, lang_attn_probs))

    assert state_proj.shape == (B, H)
    assert logit.shape == (B, C)
    assert lang_attn_probs.shape == (B, S - 1)
    assert bool(jnp.all(jnp.isfinite(state_proj)))
    assert bool(jnp.all(jnp.isfinite(logit)))

    # Reference checks for both Pallas kernels (same bf16 quantization).
    out1 = action_state_project_ln(
        sentence[:, 0, :], action_feats, params['w_act'], params['b_act'],
        params['g_act_ln'], params['b_act_ln'])
    ref1 = _action_state_ref(
        sentence[:, 0, :], action_feats, params['w_act'], params['b_act'],
        params['g_act_ln'], params['b_act_ln'])
    assert float(jnp.max(jnp.abs(out1 - ref1))) < 1e-2

    h_t = jax.random.normal(ks[3], (B, H), jnp.float32)
    al = jax.random.normal(ks[4], (B, H), jnp.float32)
    av = jax.random.normal(ks[5], (B, H), jnp.float32)
    out2 = state_fuse(h_t, al, av, params['g_vl_ln'], params['b_vl_ln'],
                      params['w_state'], params['b_state'],
                      params['g_state_ln'], params['b_state_ln'])
    ref2 = _state_fuse_ref(h_t, al, av, params['g_vl_ln'], params['b_vl_ln'],
                           params['w_state'], params['b_state'],
                           params['g_state_ln'], params['b_state_ln'])
    assert float(jnp.max(jnp.abs(out2 - ref2))) < 1e-2

    print("KERNEL_OK")
</pallas_src>

<mosaic_0001>
module attributes {stable_mosaic.version = 11 : i64} {
  func.func @k(%arg0: i32, %arg1: memref<1x128xf32, #tpu.memory_space<vmem>>, %arg2: memref<8x128xf32, #tpu.memory_space<vmem>>, %arg3: memref<8x128xf32, #tpu.memory_space<vmem>>) attributes {dimension_semantics = [#tpu.dimension_semantics<arbitrary>], iteration_bounds = array<i64: 2>, scalar_prefetch = 0 : i64, scratch_operands = 0 : i64, tpu.core_type = #tpu.core_type<tc>, window_params = [{pipeline_mode = #tpu.pipeline_mode<synchronous>, transform_indices = @transform_0, window_bounds = array<i64: 1, 128>}, {transform_indices = @transform_1, window_bounds = array<i64: 8, 128>}, {transform_indices = @transform_2, window_bounds = array<i64: 8, 128>}]} {
    %c0 = arith.constant 0 : index
    %c0_0 = arith.constant 0 : index
    %0 = vector.load %arg2[%c0, %c0_0] : memref<8x128xf32, #tpu.memory_space<vmem>>, vector<8x128xf32>
    %c0_1 = arith.constant 0 : index
    %c0_2 = arith.constant 0 : index
    %1 = vector.load %arg1[%c0_1, %c0_2] : memref<1x128xf32, #tpu.memory_space<vmem>>, vector<1x128xf32>
    %2 = vector.broadcast %1 : vector<1x128xf32> to vector<8x128xf32>
    %3 = arith.addf %0, %2 : vector<8x128xf32>
    %c0_3 = arith.constant 0 : index
    %c0_4 = arith.constant 0 : index
    %4 = vector.load %arg3[%c0_3, %c0_4] : memref<8x128xf32, #tpu.memory_space<vmem>>, vector<8x128xf32>
    tpu.vector_store %arg3[%c0_3, %c0_4], %3 {strides = array<i32>} : memref<8x128xf32, #tpu.memory_space<vmem>>, vector<8x128xf32>,
    return
  }
  func.func @transform_0(%arg0: i32) -> (i32, i32) {
    %c0_i32 = arith.constant 0 : i32
    %c0_i32_0 = arith.constant 0 : i32
    %c0_i32_1 = arith.constant 0 : i32
    return %c0_i32, %c0_i32_0 : i32, i32
  }
  func.func @transform_1(%arg0: i32) -> (i32, i32) {
    %c0_i32 = arith.constant 0 : i32
    %c0_i32_0 = arith.constant 0 : i32
    return %arg0, %c0_i32 : i32, i32
  }
  func.func @transform_2(%arg0: i32) -> (i32, i32) {
    %c0_i32 = arith.constant 0 : i32
    %c0_i32_0 = arith.constant 0 : i32
    return %arg0, %c0_i32 : i32, i32
  }
}

module attributes {stable_mosaic.version = 11 : i64} {
  func.func @_action_state_kernel(%arg0: i32, %arg1: memref<8x128xf32, #tpu.memory_space<vmem>>, %arg2: memref<8x128xf32, #tpu.memory_space<vmem>>, %arg3: memref<256x128xbf16, #tpu.memory_space<vmem>>, %arg4: memref<1x128xf32, #tpu.memory_space<vmem>>, %arg5: memref<1x128xf32, #tpu.memory_space<vmem>>, %arg6: memref<1x128xf32, #tpu.memory_space<vmem>>, %arg7: memref<8x128xf32, #tpu.memory_space<vmem>>) attributes {dimension_semantics = [#tpu.dimension_semantics<parallel>], iteration_bounds = array<i64: 2>, scalar_prefetch = 0 : i64, scratch_operands = 0 : i64, tpu.core_type = #tpu.core_type<tc>, window_params = [{transform_indices = @transform_0, window_bounds = array<i64: 8, 128>}, {transform_indices = @transform_1, window_bounds = array<i64: 8, 128>}, {pipeline_mode = #tpu.pipeline_mode<synchronous>, transform_indices = @transform_2, window_bounds = array<i64: 256, 128>}, {pipeline_mode = #tpu.pipeline_mode<synchronous>, transform_indices = @transform_3, window_bounds = array<i64: 1, 128>}, {pipeline_mode = #tpu.pipeline_mode<synchronous>, transform_indices = @transform_4, window_bounds = array<i64: 1, 128>}, {pipeline_mode = #tpu.pipeline_mode<synchronous>, transform_indices = @transform_5, window_bounds = array<i64: 1, 128>}, {transform_indices = @transform_6, window_bounds = array<i64: 8, 128>}]} {
    %c0 = arith.constant 0 : index
    %c0_0 = arith.constant 0 : index
    %0 = vector.load %arg1[%c0, %c0_0] : memref<8x128xf32, #tpu.memory_space<vmem>>, vector<8x128xf32>
    %1 = arith.truncf %0 : vector<8x128xf32> to vector<8x128xbf16>
    %c0_1 = arith.constant 0 : index
    %c0_2 = arith.constant 0 : index
    %2 = vector.load %arg2[%c0_1, %c0_2] : memref<8x128xf32, #tpu.memory_space<vmem>>, vector<8x128xf32>
    %3 = arith.truncf %2 : vector<8x128xf32> to vector<8x128xbf16>
    %4 = tpu.concatenate %1, %3 in 1 : vector<8x128xbf16>, vector<8x128xbf16> -> vector<8x256xbf16>
    %c0_3 = arith.constant 0 : index
    %c0_4 = arith.constant 0 : index
    %5 = vector.load %arg3[%c0_3, %c0_4] : memref<256x128xbf16, #tpu.memory_space<vmem>>, vector<256x128xbf16>
    %cst = arith.constant dense<0.000000e+00> : vector<8x128xf32>
    %6 = tpu.matmul %4, %5, %cst {dimension_numbers = #tpu.dot_dimension_numbers<[1], [0], [0], [1], [0, 0, 1, 1], [], []>} : vector<8x256xbf16>, vector<256x128xbf16>, vector<8x128xf32> -> vector<8x128xf32>
    %c0_5 = arith.constant 0 : index
    %c0_6 = arith.constant 0 : index
    %7 = vector.load %arg4[%c0_5, %c0_6] : memref<1x128xf32, #tpu.memory_space<vmem>>, vector<1x128xf32>
    %8 = vector.broadcast %7 : vector<1x128xf32> to vector<8x128xf32>
    %9 = arith.addf %6, %8 : vector<8x128xf32>
    %10 = math.tanh %9 : vector<8x128xf32>
    %cst_7 = arith.constant dense<0.000000e+00> : vector<8xf32>
    %11 = vector.multi_reduction <add>, %10, %cst_7 [1] : vector<8x128xf32> to vector<8xf32>
    %12 = vector.shape_cast %11 : vector<8xf32> to vector<8x1xf32>
    %cst_8 = arith.constant 1.280000e+02 : f32
    %13 = vector.broadcast %cst_8 : f32 to vector<8x1xf32>
    %14 = arith.divf %12, %13 : vector<8x1xf32>
    %15 = vector.broadcast %14 : vector<8x1xf32> to vector<8x128xf32>
    %16 = arith.subf %10, %15 : vector<8x128xf32>
    %17 = vector.broadcast %14 : vector<8x1xf32> to vector<8x128xf32>
    %18 = arith.subf %10, %17 : vector<8x128xf32>
    %19 = arith.mulf %16, %18 : vector<8x128xf32>
    %cst_9 = arith.constant dense<0.000000e+00> : vector<8xf32>
    %20 = vector.multi_reduction <add>, %19, %cst_9 [1] : vector<8x128xf32> to vector<8xf32>
    %21 = vector.shape_cast %20 : vector<8xf32> to vector<8x1xf32>
    %cst_10 = arith.constant 1.280000e+02 : f32
    %22 = vector.broadcast %cst_10 : f32 to vector<8x1xf32>
    %23 = arith.divf %21, %22 : vector<8x1xf32>
    %24 = vector.broadcast %14 : vector<8x1xf32> to vector<8x128xf32>
    %25 = arith.subf %10, %24 : vector<8x128xf32>
    %cst_11 = arith.constant 9.99999996E-13 : f32
    %26 = vector.broadcast %cst_11 : f32 to vector<8x1xf32>
    %27 = arith.addf %23, %26 : vector<8x1xf32>
    %28 = math.rsqrt %27 : vector<8x1xf32>
    %29 = vector.broadcast %28 : vector<8x1xf32> to vector<8x128xf32>
    %30 = arith.mulf %25, %29 : vector<8x128xf32>
    %c0_12 = arith.constant 0 : index
    %c0_13 = arith.constant 0 : index
    %31 = vector.load %arg5[%c0_12, %c0_13] : memref<1x128xf32, #tpu.memory_space<vmem>>, vector<1x128xf32>
    %32 = vector.broadcast %31 : vector<1x128xf32> to vector<8x128xf32>
    %33 = arith.mulf %32, %30 : vector<8x128xf32>
    %c0_14 = arith.constant 0 : index
    %c0_15 = arith.constant 0 : index
    %34 = vector.load %arg6[%c0_14, %c0_15] : memref<1x128xf32, #tpu.memory_space<vmem>>, vector<1x128xf32>
    %35 = vector.broadcast %34 : vector<1x128xf32> to vector<8x128xf32>
    %36 = arith.addf %33, %35 : vector<8x128xf32>
    %c0_16 = arith.constant 0 : index
    %c0_17 = arith.constant 0 : index
    %37 = vector.load %arg7[%c0_16, %c0_17] : memref<8x128xf32, #tpu.memory_space<vmem>>, vector<8x128xf32>
    tpu.vector_store %arg7[%c0_16, %c0_17], %36 {strides = array<i32>} : memref<8x128xf32, #tpu.memory_space<vmem>>, vector<8x128xf32>,
    return
  }
  func.func @transform_0(%arg0: i32) -> (i32, i32) {
    %c0_i32 = arith.constant 0 : i32
    %c0_i32_0 = arith.constant 0 : i32
    return %arg0, %c0_i32 : i32, i32
  }
  func.func @transform_1(%arg0: i32) -> (i32, i32) {
    %c0_i32 = arith.constant 0 : i32
    %c0_i32_0 = arith.constant 0 : i32
    return %arg0, %c0_i32 : i32, i32
  }
  func.func @transform_2(%arg0: i32) -> (i32, i32) {
    %c0_i32 = arith.constant 0 : i32
    %c0_i32_0 = arith.constant 0 : i32
    %c0_i32_1 = arith.constant 0 : i32
    return %c0_i32, %c0_i32_0 : i32, i32
  }
  func.func @transform_3(%arg0: i32) -> (i32, i32) {
    %c0_i32 = arith.constant 0 : i32
    %c0_i32_0 = arith.constant 0 : i32
    %c0_i32_1 = arith.constant 0 : i32
    return %c0_i32, %c0_i32_0 : i32, i32
  }
  func.func @transform_4(%arg0: i32) -> (i32, i32) {
    %c0_i32 = arith.constant 0 : i32
    %c0_i32_0 = arith.constant 0 : i32
    %c0_i32_1 = arith.constant 0 : i32
    return %c0_i32, %c0_i32_0 : i32, i32
  }
  func.func @transform_5(%arg0: i32) -> (i32, i32) {
    %c0_i32 = arith.constant 0 : i32
    %c0_i32_0 = arith.constant 0 : i32
    %c0_i32_1 = arith.constant 0 : i32
    return %c0_i32, %c0_i32_0 : i32, i32
  }
  func.func @transform_6(%arg0: i32) -> (i32, i32) {
    %c0_i32 = arith.constant 0 : i32
    %c0_i32_0 = arith.constant 0 : i32
    return %arg0, %c0_i32 : i32, i32
  }
}

</mosaic_0001>

<bundles_post_ra>
// kernel: tpu_custom_call.1
= control target key start
LH: loop header
LB: loop body
LE: loop exit
PB: predicated region body
PF: predicated region fallthrough
CT: control target
= control target key end

     0   :  { %7 = vsyncpa [#allocation3], 0  ;;  %s699_s0 = inlined_call_operand.hbm [shape: f32[1,128], index: 0, kind: input, shape index: {}]   ;;  %s700_s1 = inlined_call_operand.hbm [shape: f32[16,128], index: 1, kind: input, shape index: {}]   ;;  %s701_s2 = inlined_call_operand.hbm [shape: f32[16,128], index: 2, kind: output, shape index: {}]  }
   0x1   :  { %8 = vsyncpa [#allocation6], 0 }
   0x2   :  { %10 = vsyncpa [#allocation6 + $0x1], 0 }
   0x3   :  { %11 = vsyncpa [#allocation4], 0 }
   0x4   :  { %13 = vsyncpa [#allocation4 + $0x1], 0  ;;  %s498_s9 = smov 0   ;;  %s500_s10 = smov 0  }
   0x5   :  { %s502_s11 = smov 0   ;;  %s504_s12 = smov 0  }
   0x6 LB: > { %s519_s13 = sadd.s32 4294967295, %s478_s12   ;;  %s278_s14 = sadd.s32 4294967294, %s478_s12   ;;  %s478_s12 = sphi %s504_s12, %s725_s12   ;;  %s474_s11 = sphi %s502_s11, %s724_s11   ;;  %s470_s10 = sphi %s500_s10, %s723_s10   ;;  %s466_s9 = sphi %s498_s9, %s722_s9  }
   0x7   : > { %p60_p0 = scmp.ne.s32.totalorder %s470_s10, %s466_s9  ;;  %p702_p1 = scmp.eq.s32.totalorder %s519_s13, 0 }
   0x8   : > { %p90_p3 = scmp.eq.s32.totalorder %s278_s14, 1  ;;  %p279_p5 = scmp.ge.s32.totalorder %s478_s12, 1 }
   0x9   : > { %p528_p4 = por %p702_p1, %p60_p0  ;;  %p97_p7 = scmp.lt.s32.totalorder %s478_s12, 3 }
   0xa   : > { %p533_p6 = por %p90_p3, %p60_p0  ;;  %s480_s18 = smov [#allocation2]  }
   0xb   : > { %s705_s15 = scalar_select %p528_p4, 1, 0 }
   0xc   : > { %s706_s16 = scalar_select %p533_p6, 1, 0 }
   0xd   : > { %p538_p8 = pnand %p279_p5, %p97_p7  ;;  %s110_s19 = sshll.u32 %s480_s18, 4  ;;  %s111_s19 = int_to_ptr.vmem [resolvable:$true] %s110_s19 }
   0xe   : > { %s546_s20 = sadd.s32 1, %s478_s12   ;;  %s47_s24 = sadd.s32 1, %s474_s11 }
   0xf   : > { %s707_s17 = scalar_select %p538_p8, 1, 0 }
  0x10   : > { %p301_p10 = pneg %p538_p8  ;;  %s44_s22 = ssub.s32 %s478_s12, %s546_s20 }
  0x11   : > { %p556_p12 = scmp.eq.s32.totalorder %s44_s22, 0  ;;  %s350_s27 = scalar_lea.hbm %s699_s0, 16 }
  0x12   : > { %p550_p11 = pnand %p301_p10, %p702_p1  ;;  %p351_p0 = scmp.ne.s32.totalorder %s699_s0, %s350_s27 }
  0x13   : > { %s709_s23 = scalar_select %p556_p12, 1, 0 }
  0x14   : > { %p352_p3 = pneg %p550_p11  ;;  %p357_p10 = scmp.lt.u32.totalorder %s350_s27, %s699_s0 }
  0x16   : > { %p353_p5 = pnand %p352_p3, %p351_p0 }
  0x18   : > { %p354_p7 = pneg %p353_p5 }
  0x1a   : > { %p359_p9 = pnand %p357_p10, %p354_p7 }
  0x1c   : > { %362 = shalt.err (!%p359_p9)
}
  0x1d   : > { %s363_s4 = scalar_lea.vmem %s111_s19, 16  ;;  %s370_s5 = scalar_lea.vmem %s111_s19, 32 }
  0x1e   : > { %p364_p1 = scmp.ne.s32.totalorder %s111_s19, %s363_s4  ;;  %p371_p6 = scmp.lt.s32.totalorder %s111_s19, %s111_s19 }
  0x1f   : > { %p372_p4 = scmp.lt.s32.totalorder %s370_s5, %s363_s4 }
  0x20   : > { %p366_p2 = pnand %p364_p1, %p352_p3 }
  0x21   : > { %p373_p8 = por %p372_p4, %p371_p6 }
  0x22   : > { %p367_p13 = pneg %p366_p2 }
  0x24   : > { %p374_p12 = pnand %p373_p8, %p367_p13 }
  0x26   : > { %377 = shalt.err (!%p374_p12)
}
  0x27   : > { %304 = dma.hbm_to_vmem [thread:$0]  (!%p550_p11), %s699_s0, 16, %s111_s19, [#allocation3]  }
  0x28   : > { %p710_p1 = scmp.ne.s32.totalorder %s709_s23, 0  ;;  %p55_p2 = scmp.eq.s32.totalorder %s478_s12, 0 }
  0x29   : > { %p711_p4 = scmp.ne.s32.totalorder %s474_s11, %s470_s10  ;;  %p712_p6 = scmp.eq.s32.totalorder %s519_s13, 1 }
  0x2a   : > { %s582_s8 = scalar_select %p710_p1, %s474_s11, %s47_s24  }
  0x2b   : > { %p590_p8 = por %p712_p6, %p711_p4  ;;  %p314_p9 = scmp.lt.s32.totalorder %s478_s12, 2 }
  0x2c   : > { %s121_s18 = sand.u32 1, %s474_s11   ;;  %p714_p12 = pmov %p711_p4 }
  0x2d   : > { %s282_s21 = sshll.u32 %s121_s18, 3  ;;  %s283_s22 = sshll.u32 %s478_s12, 7 }
  0x2e   : > { %p56_p13 = por %p55_p2, %p714_p12  ;;  %s603_s19 = scalar_lea.hbm %s700_s1, %s283_s22 }
  0x2f   : > { %s125_s23 = scalar_lea.vmem [#allocation5], %s282_s21  ;;  %s122_s28 = scalar_lea.sflag [#allocation6], %s121_s18 }
  0x30   : > { %s132_s24 = sshll.u32 %s125_s23, 4  ;;  %p605_p11 = pnand %p314_p9, %p56_p13  ;;  %s609_s24 = int_to_ptr.vmem [resolvable:$true] %s132_s24 }
  0x31   : > { %s378_s29 = scalar_lea.hbm %s603_s19, 128  ;;  %s383_s4 = scalar_lea.hbm %s700_s1, 256 }
  0x32   : > { %p379_p0 = scmp.ne.s32.totalorder %s603_s19, %s378_s29  ;;  %p380_p3 = pneg %p605_p11 }
  0x33   : > { %p384_p10 = scmp.lt.u32.totalorder %s603_s19, %s700_s1  ;;  %p385_p1 = scmp.lt.u32.totalorder %s383_s4, %s378_s29 }
  0x34   : > { %p381_p5 = pnand %p380_p3, %p379_p0  ;;  %p387_p4 = scmp.lt.u32.totalorder %s378_s29, %s603_s19 }
  0x35   : > { %p386_p2 = por %p385_p1, %p384_p10 }
  0x36   : > { %p382_p7 = pneg %p381_p5 }
  0x37   : > { %p388_p6 = por %p387_p4, %p386_p2 }
  0x39   : > { %p389_p9 = pnand %p388_p6, %p382_p7 }
  0x3b   : > { %392 = shalt.err (!%p389_p9)
}
  0x3c   : > { %s393_s7 = scalar_lea.vmem %s609_s24, 128  ;;  %s481_s18 = smov [#allocation5]  }
  0x3d   : > { %p394_p12 = scmp.ne.s32.totalorder %s609_s24, %s393_s7  ;;  %s398_s21 = sshll.u32 %s481_s18, 4  ;;  %s399_s21 = int_to_ptr.vmem [resolvable:$false] %s398_s21 }
  0x3e   : > { %s400_s22 = scalar_lea.vmem %s399_s21, 256  ;;  %p401_p5 = scmp.lt.s32.totalorder %s609_s24, %s399_s21 }
  0x3f   : > { %p396_p13 = pnand %p394_p12, %p380_p3  ;;  %p402_p10 = scmp.lt.s32.totalorder %s400_s22, %s393_s7 }
  0x41   : > { %p397_p0 = pneg %p396_p13  ;;  %p403_p1 = por %p402_p10, %p401_p5 }
  0x43   : > { %p404_p2 = pnand %p403_p1, %p397_p0 }
  0x45   : > { %407 = shalt.err (!%p404_p2)
}
  0x46   : > { %308 = dma.hbm_to_vmem [thread:$0]  (!%p605_p11), %s603_s19, 128, %s609_s24, %s122_s28  }
  0x47   : > { %p716_p7 = scmp.ne.s32.totalorder %s707_s17, 0 }
  0x48   : > { %p717_p3 = scmp.eq.s32.totalorder (!%p716_p7), %s519_s13, 0 }
  0x49   : > { %141 = sbr.rel (%p716_p7) target bundleno = 110 (0x6e), region = 28 }
  0x50   : > { %453 = dma.done.wait (%p717_p3), [#allocation3], 16   ;;  %p718_p4 = pmov %p717_p3 }
  0x51   : > { %s643_s25 = sand.u32 1, %s470_s10   ;;  %p719_p6 = scmp.ne.s32.totalorder %s705_s15, 0 }
  0x52   : > { %455 = vsyncadd (%p718_p4), [#allocation3], 4294967280  ;;  %s286_s26 = sshll.u32 %s643_s25, 3  ;;  %s148_s23 = scalar_lea.sflag [#allocation6], %s643_s25 }
  0x53   : > { %s151_s27 = scalar_lea.vmem [#allocation5], %s286_s26 }
  0x54   : > { %457 = dma.done.wait (%p719_p6), %s148_s23, 128  }
  0x55   : > { %459 = vsyncadd (%p719_p6), %s148_s23, 4294967168  ;;  %s171_s17 = scalar_lea.vmem [#allocation7], %s286_s26  ;;  %s290_s24 = sshll.u32 %s519_s13, 7  ;;  %v172_v0 = vld [vmem:[%s151_s27] sm:$0xff]  ;;  %v288_v1 = vld [vmem:[#allocation2] ss:$0 sm:$0xff] }
  0x56   : > { %s196_s19 = sshll.u32 %s171_s17, 4  ;;  %v180_v2 = vadd.f32 %v288_v1, %v172_v0  ;;  %s657_s30 = scalar_lea.hbm %s701_s2, %s290_s24  ;;  %s652_s19 = int_to_ptr.vmem [resolvable:$true] %s196_s19 }
  0x57   : > { %s183_s15 = scalar_lea.sflag [#allocation4], %s643_s25  ;;  %s408_s3 = scalar_lea.vmem %s652_s19, 128 }
  0x58   : > { %181 = vst [vmem:[%s171_s17] sm:$0xff] %v180_v2  ;;  %p409_p11 = scmp.ne.s32.totalorder %s652_s19, %s408_s3  ;;  %s482_s13 = smov [#allocation7]  }
  0x59   : > { %s412_s4 = sshll.u32 %s482_s13, 4  ;;  %s413_s4 = int_to_ptr.vmem [resolvable:$false] %s412_s4 }
  0x5a   : > { %p410_p9 = pnand %p409_p11, %p590_p8  ;;  %s414_s5 = scalar_lea.vmem %s413_s4, 256 }
  0x5b   : > { %p415_p13 = scmp.lt.s32.totalorder %s652_s19, %s413_s4  ;;  %p416_p0 = scmp.lt.s32.totalorder %s414_s5, %s408_s3 }
  0x5c   : > { %p411_p12 = pneg %p410_p9 }
  0x5d   : > { %p417_p5 = por %p416_p0, %p415_p13 }
  0x5f   : > { %p418_p10 = pnand %p417_p5, %p411_p12 }
  0x61   : > { %421 = shalt.err (!%p418_p10)
}
  0x62   : > { %s422_s6 = scalar_lea.hbm %s657_s30, 128  ;;  %s426_s21 = scalar_lea.hbm %s701_s2, 256 }
  0x63   : > { %p423_p1 = scmp.ne.s32.totalorder %s657_s30, %s422_s6  ;;  %p427_p3 = scmp.lt.u32.totalorder %s657_s30, %s701_s2 }
  0x64   : > { %p428_p4 = scmp.lt.u32.totalorder %s426_s21, %s422_s6  ;;  %p430_p11 = scmp.lt.u32.totalorder %s422_s6, %s657_s30 }
  0x65   : > { %p424_p2 = pnand %p423_p1, %p590_p8 }
  0x66   : > { %p429_p6 = por %p428_p4, %p427_p3 }
  0x67   : > { %p425_p7 = pneg %p424_p2 }
  0x68   : > { %p431_p9 = por %p430_p11, %p429_p6 }
  0x6a   : > { %p432_p12 = pnand %p431_p9, %p425_p7 }
  0x6c   : > { %435 = shalt.err (!%p432_p12)
}
  0x6d   : > { %299 = dma.vmem_to_hbm [thread:$0]  (%p590_p8), %s652_s19, 128, %s657_s30, %s183_s15  }
  0x6e PF: > { %s208_s26 = sand.u32 1, %s466_s9   ;;  %p720_p13 = scmp.ne.s32.totalorder %s706_s16, 0 }
  0x6f   : > { %p721_p0 = scmp.ge.s32.totalorder %s478_s12, 2  ;;  %s209_s23 = scalar_lea.sflag [#allocation4], %s208_s26 }
  0x71   : > { %p310_p5 = pnand %p721_p0, %p720_p13 }
  0x73   : > { %461 = dma.done.wait (!%p310_p5), %s209_s23, 128  }
  0x74   : > { %463 = vsyncadd (!%p310_p5), %s209_s23, 4294967168  ;;  %p16_p10 = scmp.ge.s32.totalorder %s546_s20, 4   ;;  %s722_s9 = smov %s470_s10 }
  0x75   : > { %s723_s10 = smov %s474_s11  ;;  %s724_s11 = smov %s582_s8 }
  0x76   : > { %s725_s12 = smov %s546_s20  ;;  %18 = sbr.rel (!%p16_p10) target bundleno = 6 (0x6), region = 78 }
  0x7d   :  { %214 = vsyncpa [#allocation3], 1 }
  0x7e   :  { %216 = vsyncpa [#allocation3 + $0x1], 1 }
  0x7f   :  { %217 = vsyncpa [#allocation6], 1 }
  0x80   :  { %219 = vsyncpa [#allocation6 + $0x1], 1 }
  0x81   :  { %220 = vsyncpa [#allocation4], 1 }
  0x82   :  { %222 = vsyncpa [#allocation4 + $0x1], 1 }

// kernel: tpu_custom_call.1
= control target key start
LH: loop header
LB: loop body
LE: loop exit
PB: predicated region body
PF: predicated region fallthrough
CT: control target
= control target key end

     0   :  { %s1237_s0 = inlined_call_operand.hbm [shape: f32[16,128], index: 0, kind: input, shape index: {}]   ;;  %s1238_s1 = inlined_call_operand.hbm [shape: f32[16,128], index: 1, kind: input, shape index: {}]   ;;  %s1239_s2 = inlined_call_operand.hbm [shape: bf16[256,128], index: 2, kind: input, shape index: {}]   ;;  %s1240_s3 = inlined_call_operand.vmem [shape: f32[1,128], index: 3, kind: input, shape index: {}]   ;;  %s1241_s4 = inlined_call_operand.vmem [shape: f32[1,128], index: 4, kind: input, shape index: {}]   ;;  %s1242_s5 = inlined_call_operand.vmem [shape: f32[1,128], index: 5, kind: input, shape index: {}]   ;;  %s1243_s6 = inlined_call_operand.hbm [shape: f32[16,128], index: 6, kind: output, shape index: {}]  }
   0x1   :  { %1249 = sst [smem:[#allocation15_spill]] %s1239_s2 }
   0x2   :  { %11 = vsyncpa [#allocation3], 0 }
   0x3   :  { %13 = vsyncpa [#allocation3 + $0x1], 0 }
   0x4   :  { %14 = vsyncpa [#allocation6], 0 }
   0x5   :  { %16 = vsyncpa [#allocation6 + $0x1], 0 }
   0x6   :  { %17 = vsyncpa [#allocation4], 0 }
   0x7   :  { %19 = vsyncpa [#allocation4 + $0x1], 0  ;;  %s991_s21 = smov 0   ;;  %s993_s22 = smov 0  }
   0x8   :  { %s995_s23 = smov 0   ;;  %s997_s24 = smov 0  }
   0x9 LB: > { %1250 = sst [smem:[#allocation13_spill]] %s944_s23  ;;  %s1012_s25 = sadd.s32 4294967295, %s948_s24   ;;  %s948_s24 = sphi %s997_s24, %s1272_s24   ;;  %s944_s23 = sphi %s995_s23, %s1271_s23   ;;  %s940_s22 = sphi %s993_s22, %s1270_s22   ;;  %s936_s21 = sphi %s991_s21, %s1269_s21  }
   0xa   : > { %s644_s26 = sadd.s32 4294967294, %s948_s24   ;;  %p45_p0 = scmp.ne.s32.totalorder %s940_s22, %s936_s21 }
   0xb   : > { %p1244_p1 = scmp.eq.s32.totalorder %s1012_s25, 0  ;;  %p185_p3 = scmp.eq.s32.totalorder %s644_s26, 1 }
   0xc   : > { %p645_p5 = scmp.ge.s32.totalorder %s948_s24, 1  ;;  %p192_p7 = scmp.lt.s32.totalorder %s948_s24, 3 }
   0xd   : > { %p1021_p4 = por %p1244_p1, %p45_p0  ;;  %p1026_p6 = por %p185_p3, %p45_p0 }
   0xe   : > { %p1031_p8 = pnand %p645_p5, %p192_p7  ;;  %s950_s30 = smov [#allocation7]  }
   0xf   : > { %s1251_s27 = scalar_select %p1021_p4, 1, 0 }
  0x10   : > { %s1252_s28 = scalar_select %p1026_p6, 1, 0 }
  0x11   : > { %s1253_s29 = scalar_select %p1031_p8, 1, 0 }
  0x12   : > { %s204_s7 = sshll.u32 %s950_s30, 4  ;;  %p712_p9 = pneg %p1031_p8  ;;  %s1035_s7 = int_to_ptr.vmem [resolvable:$true] %s204_s7 }
  0x13   : > { %s1047_s9 = sadd.s32 1, %s948_s24   ;;  %s32_s10 = sadd.s32 1, %s944_s23 }
  0x14   : > { %p1042_p11 = pnand %p712_p9, %p1244_p1  ;;  %s29_s11 = ssub.s32 %s948_s24, %s1047_s9 }
  0x15   : > { %s1255_s2 = sld [smem:[#allocation15_spill]] }
  0x16   : > { %p788_p13 = pneg %p1042_p11 }
  0x1b   : > { %s786_s14 = scalar_lea.hbm %s1255_s2, 2048 }
  0x1c   : > { %p787_p12 = scmp.ne.s32.totalorder %s1255_s2, %s786_s14  ;;  %p793_p5 = scmp.lt.u32.totalorder %s786_s14, %s1255_s2 }
  0x1e   : > { %p789_p0 = pnand %p788_p13, %p787_p12 }
  0x20   : > { %p790_p3 = pneg %p789_p0 }
  0x22   : > { %p795_p7 = pnand %p793_p5, %p790_p3 }
  0x24   : > { %798 = shalt.err (!%p795_p7)
}
  0x25   : > { %s799_s19 = scalar_lea.vmem %s1035_s7, 2048  ;;  %p807_p2 = scmp.lt.s32.totalorder %s1035_s7, %s1035_s7 }
  0x26   : > { %p800_p9 = scmp.ne.s32.totalorder %s1035_s7, %s799_s19  ;;  %p808_p6 = scmp.lt.s32.totalorder %s799_s19, %s799_s19 }
  0x28   : > { %p802_p10 = pnand %p800_p9, %p788_p13  ;;  %p809_p4 = por %p808_p6, %p807_p2 }
  0x2a   : > { %p803_p1 = pneg %p802_p10 }
  0x2c   : > { %p810_p8 = pnand %p809_p4, %p803_p1 }
  0x2e   : > { %813 = shalt.err (!%p810_p8)
}
  0x2f   : > { %s951_s20 = smov 64   ;;  %s952_s26 = smov 4  }
  0x30   : > { %715 = dma.hbm_to_vmem [thread:$0]  (!%p1042_p11), %s1255_s2, 2048, %s1035_s7, [#allocation6], %s951_s20, %s951_s20, %s952_s26  }
  0x31   : > { %p30_p2 = scmp.eq.s32.totalorder %s29_s11, 0  ;;  %p39_p1 = scmp.ne.s32.totalorder %s944_s23, %s940_s22 }
  0x32   : > { %p40_p4 = scmp.eq.s32.totalorder %s948_s24, 0  ;;  %p728_p6 = scmp.lt.s32.totalorder %s948_s24, 2 }
  0x33   : > { %s1078_s13 = scalar_select %p30_p2, %s944_s23, %s32_s10  }
  0x34   : > { %p41_p8 = por %p40_p4, %p39_p1  ;;  %p1257_p10 = scmp.eq.s32.totalorder %s1012_s25, 1 }
  0x35   : > { %1256 = sst [smem:[#allocation14_spill]] %s1078_s13  ;;  %s227_s15 = sand.u32 1, %s944_s23  }
  0x36   : > { %p1082_p12 = por %p1257_p10, %p39_p1  ;;  %s649_s16 = sshll.u32 %s948_s24, 7 }
  0x37   : > { %s1088_s17 = sshll.u32 %s227_s15, 3  ;;  %s1093_s7 = scalar_lea.hbm %s1237_s0, %s649_s16 }
  0x38   : > { %s1258_s14 = scalar_select %p1082_p12, 1, 0 }
  0x39   : > { %s231_s10 = scalar_lea.vmem [#allocation2], %s1088_s17  ;;  %p1096_p11 = pnand %p728_p6, %p41_p8 }
  0x3a   : > { %s238_s11 = sshll.u32 %s231_s10, 4  ;;  %s1105_s30 = scalar_lea.hbm %s1238_s1, %s649_s16  ;;  %s1100_s11 = int_to_ptr.vmem [resolvable:$true] %s238_s11 }
  0x3b   : > { %s228_s12 = scalar_lea.sflag [#allocation3], %s227_s15  ;;  %s814_s8 = scalar_lea.hbm %s1093_s7, 128 }
  0x3c   : > { %p815_p13 = scmp.ne.s32.totalorder %s1093_s7, %s814_s8  ;;  %p816_p0 = pneg %p1096_p11 }
  0x3d   : > { %s819_s2 = scalar_lea.hbm %s1237_s0, 256  ;;  %p820_p7 = scmp.lt.u32.totalorder %s1093_s7, %s1237_s0 }
  0x3e   : > { %p817_p3 = pnand %p816_p0, %p815_p13  ;;  %p821_p9 = scmp.lt.u32.totalorder %s819_s2, %s814_s8 }
  0x3f   : > { %p823_p1 = scmp.lt.u32.totalorder %s814_s8, %s1093_s7 }
  0x40   : > { %p818_p5 = pneg %p817_p3  ;;  %p822_p2 = por %p821_p9, %p820_p7 }
  0x42   : > { %p824_p4 = por %p823_p1, %p822_p2 }
  0x44   : > { %p825_p6 = pnand %p824_p4, %p818_p5 }
  0x46   : > { %828 = shalt.err (!%p825_p6)
}
  0x47   : > { %s829_s15 = scalar_lea.vmem %s1100_s11, 128  ;;  %s953_s16 = smov [#allocation2]  }
  0x48   : > { %p830_p8 = scmp.ne.s32.totalorder %s1100_s11, %s829_s15  ;;  %s834_s20 = sshll.u32 %s953_s16, 4  ;;  %s835_s20 = int_to_ptr.vmem [resolvable:$false] %s834_s20 }
  0x49   : > { %s836_s23 = scalar_lea.vmem %s835_s20, 256  ;;  %p837_p3 = scmp.lt.s32.totalorder %s1100_s11, %s835_s20 }
  0x4a   : > { %p832_p10 = pnand %p830_p8, %p816_p0  ;;  %p838_p7 = scmp.lt.s32.totalorder %s836_s23, %s829_s15 }
  0x4c   : > { %p833_p13 = pneg %p832_p10  ;;  %p839_p9 = por %p838_p7, %p837_p3 }
  0x4e   : > { %p840_p2 = pnand %p839_p9, %p833_p13 }
  0x50   : > { %843 = shalt.err (!%p840_p2)
}
  0x51   : > { %719 = dma.hbm_to_vmem [thread:$0]  (!%p1096_p11), %s1093_s7, 128, %s1100_s11, %s228_s12  }
  0x52   : > { %s245_s2 = sand.u32 1, %s948_s24   ;;  %s249_s13 = scalar_lea.vmem [#allocation5], %s1088_s17 }
  0x53   : > { %s256_s26 = sshll.u32 %s249_s13, 4  ;;  %s246_s8 = scalar_lea.sflag [#allocation6], %s245_s2  ;;  %s257_s26 = int_to_ptr.vmem [resolvable:$true] %s256_s26 }
  0x54   : > { %s844_s18 = scalar_lea.hbm %s1105_s30, 128  ;;  %s849_s16 = scalar_lea.hbm %s1238_s1, 256 }
  0x55   : > { %p845_p5 = scmp.ne.s32.totalorder %s1105_s30, %s844_s18  ;;  %p850_p6 = scmp.lt.u32.totalorder %s1105_s30, %s1238_s1 }
  0x56   : > { %p851_p8 = scmp.lt.u32.totalorder %s849_s16, %s844_s18  ;;  %p853_p13 = scmp.lt.u32.totalorder %s844_s18, %s1105_s30 }
  0x57   : > { %p847_p1 = pnand %p845_p5, %p816_p0 }
  0x58   : > { %p852_p10 = por %p851_p8, %p850_p6 }
  0x59   : > { %p848_p4 = pneg %p847_p1 }
  0x5a   : > { %p854_p3 = por %p853_p13, %p852_p10 }
  0x5c   : > { %p855_p7 = pnand %p854_p3, %p848_p4 }
  0x5e   : > { %858 = shalt.err (!%p855_p7)
}
  0x5f   : > { %s859_s17 = scalar_lea.vmem %s257_s26, 128  ;;  %s954_s7 = smov [#allocation5]  }
  0x60   : > { %p860_p9 = scmp.ne.s32.totalorder %s257_s26, %s859_s17  ;;  %s864_s11 = sshll.u32 %s954_s7, 4  ;;  %s865_s11 = int_to_ptr.vmem [resolvable:$false] %s864_s11 }
  0x61   : > { %s866_s12 = scalar_lea.vmem %s865_s11, 256  ;;  %p867_p1 = scmp.lt.s32.totalorder %s257_s26, %s865_s11 }
  0x62   : > { %p862_p2 = pnand %p860_p9, %p816_p0  ;;  %p868_p12 = scmp.lt.s32.totalorder %s866_s12, %s859_s17 }
  0x64   : > { %p863_p5 = pneg %p862_p2  ;;  %p869_p6 = por %p868_p12, %p867_p1 }
  0x66   : > { %p870_p8 = pnand %p869_p6, %p863_p5 }
  0x68   : > { %873 = shalt.err (!%p870_p8)
}
  0x69   : > { %722 = dma.hbm_to_vmem [thread:$0]  (!%p1096_p11), %s1105_s30, 128, %s257_s26, %s246_s8  }
  0x6a   : > { %p1260_p4 = scmp.ne.s32.totalorder %s1253_s29, 0 }
  0x6b   : > { %s1156_s2 = sand.u32 (!%p1260_p4), 1, %s940_s22   ;;  %p1261_p12 = scmp.ne.s32.totalorder (!%p1260_p4), %s1251_s27, 0 }
  0x6c   : > { %265 = sbr.rel (%p1260_p4) target bundleno = 708 (0x2c4), region = 44  ;;  %s1159_s13 = sshll.u32 (!%p1260_p4), %s1156_s2, 3 }
  0x6d   : > { %s268_s18 = scalar_lea.sflag (!%p1260_p4), [#allocation3], %s1156_s2  ;;  %s271_s10 = scalar_lea.vmem (!%p1260_p4), [#allocation2], %s1159_s13 }
  0x73   : > { %919 = dma.done.wait (%p1261_p12), %s268_s18, 128  }
  0x74   : > { %921 = vsyncadd (%p1261_p12), %s268_s18, 4294967168  ;;  %s276_s29 = sand.u32 1, %s1012_s25   ;;  %s280_s30 = scalar_lea.vmem [#allocation5], %s1159_s13 }
  0x75   : > { %s277_s19 = scalar_lea.sflag [#allocation6], %s276_s29 }
  0x76   : > { %923 = dma.done.wait (%p1261_p12), %s277_s19, 128  }
  0x77   : > { %925 = vsyncadd (%p1261_p12), %s277_s19, 4294967168  ;;  %p1262_p11 = scmp.eq.s32.totalorder %s1012_s25, 0 }
  0x79   : > { %927 = dma.done.wait (%p1262_p11), [#allocation6], 2048   ;;  %p1263_p0 = pmov %p1262_p11 }
  0x7a   : > { %v766_v0 = vld [vmem:[#allocation7 + $0x40] sm:$0xff]   ;;  %v768_v2 = vld [vmem:[#allocation7 + $0x48] sm:$0xff]   ;;  %v770_v4 = vld [vmem:[#allocation7 + $0x50] sm:$0xff]   ;;  %s677_s23 = sshll.u32 %s1012_s25, 7  ;;  %s317_s17 = scalar_lea.vmem [#allocation8], %s1159_s13 }
  0x7b   : > { %929 = vsyncadd (%p1263_p0), [#allocation6], 4294965248  ;;  %v767_v1 = vld [vmem:[#allocation7] sm:$0xff]   ;;  %680 = vmatprep.subr.bf16.mxu0 %v766_v0  ;;  %v769_v3 = vld [vmem:[#allocation7 + $0x8] sm:$0xff]   ;;  %s542_s7 = sshll.u32 %s317_s17, 4  ;;  %s1193_s18 = scalar_lea.hbm %s1243_s6, %s677_s23  ;;  %s1195_s7 = int_to_ptr.vmem [resolvable:$true] %s542_s7 }
  0x7c   : > { %681 = vmatpush3.bf16.msra.mxu0 %v767_v1  ;;  %v771_v5 = vld [vmem:[#allocation7 + $0x10] sm:$0xff]   ;;  %v772_v6 = vld [vmem:[#allocation7 + $0x58] sm:$0xff]   ;;  %v774_v8 = vld [vmem:[#allocation7 + $0x60] sm:$0xff]   ;;  %s874_s29 = scalar_lea.vmem %s1195_s7, 128  ;;  %p1264_p13 = scmp.ne.s32.totalorder %s1258_s14, 0 }
  0x7d   : > { %682 = vmatprep.subr.bf16.mxu0 %v768_v2  ;;  %v773_v7 = vld [vmem:[#allocation7 + $0x18] sm:$0xff]   ;;  %v775_v9 = vld [vmem:[#allocation7 + $0x20] sm:$0xff]   ;;  %v776_v10 = vld [vmem:[#allocation7 + $0x68] sm:$0xff]   ;;  %p875_p10 = scmp.ne.s32.totalorder %s1195_s7, %s874_s29  ;;  %s955_s25 = smov [#allocation8]  }
  0x7e   : > { %v321_v11 = vld [vmem:[%s280_s30] sm:$0xff]  ;;  %v777_v13 = vld [vmem:[#allocation7 + $0x28] sm:$0xff]   ;;  %v657_v21 = vld [vmem:[%s1240_s3] ss:$0 sm:$0xff]  ;;  %s878_s13 = sshll.u32 %s955_s25, 4  ;;  %s879_s13 = int_to_ptr.vmem [resolvable:$false] %s878_s13 }
  0x7f   : > { %v322_v12 = vpack.c.bf16 %v321_v11, %v321_v11  ;;  %v778_v14 = vld [vmem:[#allocation7 + $0x70] sm:$0xff]   ;;  %v780_v16 = vld [vmem:[#allocation7 + $0x78] sm:$0xff]   ;;  %v319_v18 = vld [vmem:[%s271_s10] sm:$0xff]  ;;  %s529_s10 = scalar_lea.sflag [#allocation4], %s1156_s2  ;;  %p876_p3 = pnand %p875_p10, %p1264_p13 }
  0x80   : > { %683 = vmatpush3.bf16.msra.mxu0 %v769_v3  ;;  %v779_v15 = vld [vmem:[#allocation7 + $0x30] sm:$0xff]   ;;  %v781_v17 = vld [vmem:[#allocation7 + $0x38] sm:$0xff]   ;;  %v320_v19 = vpack.c.bf16 %v319_v18, %v319_v18  ;;  %v674_v36 = vld [vmem:[%s1241_s4] ss:$0 sm:$0xff]  ;;  %s880_s19 = scalar_lea.vmem %s879_s13, 256  ;;  %p881_p9 = scmp.lt.s32.totalorder %s1195_s7, %s879_s13 }
  0x81   : > { %684 = vmatprep.subr.bf16.mxu0 %v770_v4  ;;  %490 = vmatprep.mubr.bf16.mxu0 %v322_v12  ;;  %v675_v38 = vld [vmem:[%s1242_s5] ss:$0 sm:$0xff]  ;;  %p877_p7 = pneg %p876_p3  ;;  %p882_p2 = scmp.lt.s32.totalorder %s880_s19, %s874_s29 }
  0x83   : > { %p883_p5 = por %p882_p2, %p881_p9 }
  0x84   : > { %685 = vmatpush3.bf16.msra.mxu0 %v771_v5 }
  0x85   : > { %686 = vmatprep.subr.bf16.mxu0 %v772_v6  ;;  %p884_p1 = pnand %p883_p5, %p877_p7 }
  0x88   : > { %687 = vmatpush3.bf16.msra.mxu0 %v773_v7 }
  0x89   : > { %688 = vmatprep.subr.bf16.mxu0 %v774_v8 }
  0x8c   : > { %689 = vmatpush3.bf16.msra.mxu0 %v775_v9 }
  0x8d   : > { %690 = vmatprep.subr.bf16.mxu0 %v776_v10 }
  0x90   : > { %691 = vmatpush3.bf16.msra.mxu0 %v777_v13 }
  0x91   : > { %692 = vmatprep.subr.bf16.mxu0 %v778_v14 }
  0x94   : > { %693 = vmatpush3.bf16.msra.mxu0 %v779_v15 }
  0x95   : > { %694 = vmatprep.subr.bf16.mxu0 %v780_v16 }
  0x98   : > { %695 = vmatpush3.bf16.msra.mxu0 %v781_v17 }
  0x9b   : > { %491 = vmatmul.mubr.bf16.vlgmr.msra.gmra.mrb[0].mxu0 %v320_v19 }
 0x16e   : > { %v696_v20 = vpop.f32.mrb[0].mxu0 }
 0x16f   : > { %v697_v22 = vpop.f32.mrb[1].mxu0 }
 0x170   : > { %v698_v23 = vadd.f32 %v697_v22, %v696_v20  ;;  %v699_v24 = vpop.f32.mrb[2].mxu0 }
 0x171   : > { %v700_v25 = vpop.f32.mrb[3].mxu0 }
 0x172   : > { %v493_v26 = vadd.f32 %v698_v23, %v657_v21 }
 0x174   : > { %782 = vtanh.f32 %v493_v26 }
 0x17e   : > { %v783_v27 = vpop.eup %782 }
 0x17f   : > { %499 = vadd.xlane.f32.xlu0 %v783_v27 }
 0x20c   : > { %v500_v28 = vpop.xlane.xlu0 %499 }
 0x20d   : > { %v502_v29 = vmul.f32 0.0078125, %v500_v28 }
 0x20f   : > { %v503_v30 = vsub.f32 %v783_v27, %v502_v29 }
 0x211   : > { %v504_v31 = vmul.f32 %v503_v30, %v503_v30 }
 0x213   : > { %505 = vadd.xlane.f32.xlu0 %v504_v31 }
 0x2a0   : > { %v506_v32 = vpop.xlane.xlu0 %505 }
 0x2a1   : > { %v507_v33 = vmul.f32 0.0078125, %v506_v32 }
 0x2a3   : > { %v508_v34 = vadd.f32 1e-12, %v507_v33 }
 0x2a5   : > { %784 = vrsqrt.f32 %v508_v34 }
 0x2af   : > { %v785_v35 = vpop.eup %784 }
 0x2b0   : > { %v510_v37 = vmul.f32 %v785_v35, %v503_v30 }
 0x2b2   : > { %v518_v39 = vmul.f32 %v674_v36, %v510_v37 }
 0x2b4   : > { %v526_v40 = vadd.f32 %v675_v38, %v518_v39 }
 0x2b6   : > { %527 = vst [vmem:[%s317_s17] sm:$0xff] %v526_v40 }
 0x2b7   : > { %887 = shalt.err (!%p884_p1)
}
 0x2b8   : > { %s888_s2 = scalar_lea.hbm %s1193_s18, 128  ;;  %s892_s26 = scalar_lea.hbm %s1243_s6, 256 }
 0x2b9   : > { %p889_p6 = scmp.ne.s32.totalorder %s1193_s18, %s888_s2  ;;  %p893_p12 = scmp.lt.u32.totalorder %s1193_s18, %s1243_s6 }
 0x2ba   : > { %p894_p11 = scmp.lt.u32.totalorder %s892_s26, %s888_s2  ;;  %p896_p10 = scmp.lt.u32.totalorder %s888_s2, %s1193_s18 }
 0x2bb   : > { %p890_p8 = pnand %p889_p6, %p1264_p13 }
 0x2bc   : > { %p895_p0 = por %p894_p11, %p893_p12 }
 0x2bd   : > { %p891_p4 = pneg %p890_p8 }
 0x2be   : > { %p897_p3 = por %p896_p10, %p895_p0 }
 0x2c0   : > { %p898_p7 = pnand %p897_p3, %p891_p4 }
 0x2c2   : > { %901 = shalt.err (!%p898_p7)
}
 0x2c3   : > { %710 = dma.vmem_to_hbm [thread:$0]  (%p1264_p13), %s1195_s7, 128, %s1193_s18, %s529_s10  }
 0x2c4 PF: > { %s554_s16 = sand.u32 1, %s936_s21   ;;  %p1265_p9 = scmp.ne.s32.totalorder %s1252_s28, 0 }
 0x2c5   : > { %p1266_p2 = scmp.ge.s32.totalorder %s948_s24, 2  ;;  %s555_s20 = scalar_lea.sflag [#allocation4], %s554_s16 }
 0x2c7   : > { %p724_p5 = pnand %p1266_p2, %p1265_p9 }
 0x2c9   : > { %931 = dma.done.wait (!%p724_p5), %s555_s20, 128  }
 0x2ca   : > { %933 = vsyncadd (!%p724_p5), %s555_s20, 4294967168  ;;  %s1267_s23 = sld [smem:[#allocation13_spill]]  ;;  %s1268_s17 = sld [smem:[#allocation14_spill]] }
 0x2cb   : > { %p22_p1 = scmp.ge.s32.totalorder %s1047_s9, 4   ;;  %s1269_s21 = smov %s940_s22 }
 0x2cc   : > { %s1272_s24 = smov %s1047_s9 }
 0x2cd   :  { %24 = sbr.rel (!%p22_p1) target bundleno = 9 (0x9), region = 106 }
 0x2d0   : > { %s1270_s22 = smov %s1267_s23  ;;  %s1271_s23 = smov %s1268_s17 }
 0x2d4   :  { %560 = vsyncpa [#allocation3], 1 }
 0x2d5   :  { %562 = vsyncpa [#allocation3 + $0x1], 1 }
 0x2d6   :  { %563 = vsyncpa [#allocation6], 1 }
 0x2d7   :  { %565 = vsyncpa [#allocation6 + $0x1], 1 }
 0x2d8   :  { %566 = vsyncpa [#allocation4], 1 }
 0x2d9   :  { %568 = vsyncpa [#allocation4 + $0x1], 1 }

</bundles_post_ra>
